<compile_context>
chip_gen: v6e
topology: v6e:2x2x1
jax: 0.10.0
libtpu: 0.0.40
codegen_flags: <defaults>
</compile_context>

<pallas_src>
import math

import jax
import jax.numpy as jnp
from jax.experimental import pallas as pl
from jax.experimental.pallas import tpu as pltpu


# ------------------------------ kernels ------------------------------------ #

# (tm, K) x (tn, K) -> (tm, tn): contract on the minor dim of both operands,
# i.e. x @ W^T with W kept in its native (d_out, d_in) layout.
_CONTRACT_MINOR = (((1,), (1,)), ((), ()))


def _linear_kernel_single_k(x_ref, w_ref, o_ref):
    # Whole reduction fits one K tile: direct store, no accumulator scratch.
    o_ref[...] = jax.lax.dot_general(
        x_ref[...], w_ref[...],
        dimension_numbers=_CONTRACT_MINOR,
        preferred_element_type=jnp.float32,
    ).astype(o_ref.dtype)


def _linear_kernel_multi_k(x_ref, w_ref, o_ref, acc_ref):
    # grid = (M//tm, N//tn, K//tk); K is the reduction ("arbitrary", last) axis.
    k = pl.program_id(2)
    prod = jax.lax.dot_general(
        x_ref[...], w_ref[...],
        dimension_numbers=_CONTRACT_MINOR,
        preferred_element_type=jnp.float32,
    )

    @pl.when(k == 0)
    def _():
        # First K step: write directly (saves a zero-store + RMW per out tile).
        acc_ref[...] = prod

    @pl.when(k != 0)
    def _():
        acc_ref[...] += prod

    @pl.when(k == pl.num_programs(2) - 1)
    def _():
        o_ref[...] = acc_ref[...].astype(o_ref.dtype)


# ------------------------------ tile planning ------------------------------ #

def _round_up(v: int, m: int) -> int:
    return ((v + m - 1) // m) * m


def _largest_dividing_tile(dim: int, cap: int, step: int) -> int:
    """Largest multiple of `step`, <= min(cap, dim), that divides `dim`.
    `dim` is assumed to be a multiple of `step`."""
    t = min(cap, dim)
    t -= t % step
    while t > step and dim % t != 0:
        t -= step
    return max(t, step)


def _vmem_capacity_bytes() -> int:
    try:
        return int(pltpu.get_tpu_info().vmem_capacity_bytes)
    except Exception:
        return 64 * 1024 * 1024  # conservative (v7x-sized) fallback


def _plan_tiles(M: int, K: int, N: int, compute_itemsize: int):
    """Pick (Mp, Kp, Np, tm, tk, tn).  K/N are padded only to the 128-lane
    boundary and the tiles are chosen as divisors of the padded dims, so no
    extra zero columns are streamed.  Small dims collapse to a single tile."""
    Kp = _round_up(K, 128)
    Np = _round_up(N, 128)
    Mp = _round_up(max(M, 1), 8)

    tm_cap = 512
    tn_cap = 1024
    tk_cap = 2048 if compute_itemsize <= 2 else 1024

    tk = _largest_dividing_tile(Kp, tk_cap, 128)
    tn = _largest_dividing_tile(Np, tn_cap, 128)

    tm = _largest_dividing_tile(Mp, tm_cap, 8)
    if tm < 128 and Mp > tm_cap:
        # Awkward large M: prefer a big row tile + padding over a tiny divisor.
        tm = tm_cap
        Mp = _round_up(Mp, tm)

    # Guarantee >=2 blocks along a parallel grid axis (v7x: 2 TensorCores).
    if (Mp // tm) * (Np // tn) == 1:
        if tn >= 256 and tn % 256 == 0:      # keep tn a multiple of 128
            tn //= 2
        elif tm >= 16:                       # keep tm a multiple of 8
            tm //= 2

    return Mp, Kp, Np, tm, tk, tn


# -------------------------------- wrapper ----------------------------------- #

def linear_pallas(x, weight, *, compute_dtype=None, tm=None, tn=None, tk=None):
    """y = einsum('... d_in, d_out d_in -> ... d_out', x, weight)

    weight has PyTorch Linear layout (d_out, d_in) and is consumed in that
    layout (no wrapper-side transpose pass).  `compute_dtype` (e.g.
    jnp.bfloat16) optionally narrows the operands fed to the MXU; accumulation
    is always f32 and the output keeps the promoted input dtype."""
    *batch_dims, d_in = x.shape
    d_out, d_in_w = weight.shape
    assert d_in == d_in_w, f"d_in mismatch: {d_in} vs {d_in_w}"

    M = 1
    for b in batch_dims:
        M *= b

    out_dtype = jnp.promote_types(x.dtype, weight.dtype)
    op_dtype = jnp.dtype(compute_dtype) if compute_dtype is not None else out_dtype

    Mp, Kp, Np, a_tm, a_tk, a_tn = _plan_tiles(
        M, d_in, d_out, jnp.dtype(op_dtype).itemsize)
    tm = a_tm if tm is None else tm
    tk = a_tk if tk is None else tk
    tn = a_tn if tn is None else tn
    # With auto tiles these round-ups are no-ops; user overrides may pad more.
    Mp = _round_up(Mp, tm)
    Kp = _round_up(Kp, tk)
    Np = _round_up(Np, tn)

    x2d = x.reshape(M, d_in).astype(op_dtype)
    w = jnp.asarray(weight, dtype=op_dtype)          # stays (d_out, d_in)
    if (Mp, Kp) != (M, d_in):
        x2d = jnp.pad(x2d, ((0, Mp - M), (0, Kp - d_in)))
    if (Np, Kp) != (d_out, d_in):
        w = jnp.pad(w, ((0, Np - d_out), (0, Kp - d_in)))

    n_k = Kp // tk
    itemsize = jnp.dtype(op_dtype).itemsize
    out_itemsize = jnp.dtype(out_dtype).itemsize

    # Conservative VMEM estimate for the tile plan (double-buffered inputs +
    # double-buffered output + f32 accumulator), capped generation-aware:
    # <= ~40 MiB scoped on 64 MiB-VMEM parts (v7x), <= ~96 MiB on v5e/v6e.
    vmem_est = (2 * (tm * tk + tn * tk) * itemsize
                + 2 * tm * tn * out_itemsize
                + (tm * tn * 4 if n_k > 1 else 0))
    cap = (40 * 1024 * 1024 if _vmem_capacity_bytes() <= 64 * 1024 * 1024
           else 96 * 1024 * 1024)
    vmem_limit = int(min(max(2 * vmem_est, 32 * 1024 * 1024), cap))

    if n_k == 1:
        grid_spec = pltpu.PrefetchScalarGridSpec(
            num_scalar_prefetch=0,
            grid=(Mp // tm, Np // tn),
            in_specs=[
                pl.BlockSpec((tm, Kp), lambda i, j: (i, 0)),   # x
                pl.BlockSpec((tn, Kp), lambda i, j: (j, 0)),   # W (d_out, d_in)
            ],
            out_specs=pl.BlockSpec((tm, tn), lambda i, j: (i, j)),
            scratch_shapes=[],
        )
        dim_sem = ("parallel", "parallel")
        kernel = _linear_kernel_single_k
    else:
        grid_spec = pltpu.PrefetchScalarGridSpec(
            num_scalar_prefetch=0,
            grid=(Mp // tm, Np // tn, n_k),
            in_specs=[
                pl.BlockSpec((tm, tk), lambda i, j, k: (i, k)),   # x
                pl.BlockSpec((tn, tk), lambda i, j, k: (j, k)),   # W (d_out, d_in)
            ],
            out_specs=pl.BlockSpec((tm, tn), lambda i, j, k: (i, j)),
            scratch_shapes=[pltpu.VMEM((tm, tn), jnp.float32)],
        )
        dim_sem = ("parallel", "parallel", "arbitrary")
        kernel = _linear_kernel_multi_k

    out_padded = pl.pallas_call(
        kernel,
        out_shape=jax.ShapeDtypeStruct((Mp, Np), out_dtype),
        grid_spec=grid_spec,
        compiler_params=pltpu.CompilerParams(
            dimension_semantics=dim_sem,
            vmem_limit_bytes=vmem_limit,
        ),
    )(x2d, w)

    out2d = out_padded[:M, :d_out]
    return out2d.reshape(*batch_dims, d_out)


def init_linear_weight(key, in_features, out_features, dtype=jnp.float32):
    # Matches torch.nn.init.trunc_normal_(mean=0, std=std, a=-3*std, b=3*std)
    std = math.sqrt(2.0 / (in_features + out_features))
    w = jax.random.truncated_normal(
        key, lower=-3.0, upper=3.0,
        shape=(out_features, in_features), dtype=jnp.float32,
    ) * std
    return w.astype(dtype)


# --------------------------------- demo ------------------------------------- #

if __name__ == "__main__":
    key = jax.random.PRNGKey(0)
    k_x, k_w = jax.random.split(key)

    # 1) Small shape: single-K fast path; tn is halved so the 2-D grid has
    #    two parallel blocks (both v7x TensorCores busy).
    batch, seq, d_in, d_out = 2, 8, 128, 256
    x = jax.random.normal(k_x, (batch, seq, d_in), dtype=jnp.float32)
    w = init_linear_weight(k_w, d_in, d_out, dtype=jnp.float32)
    y = linear_pallas(x, w)
    jax.block_until_ready(y)
    y_ref = jnp.einsum("...i,oi->...o", x, w, precision=jax.lax.Precision.HIGHEST)
    assert y.shape == (batch, seq, d_out)
    assert jnp.allclose(y, y_ref, atol=1e-4, rtol=1e-4)

    # 2) Awkward dims: multi-K accumulator path; d_in=1280 -> tk=640 divisor
    #    (no rounding up to 1536), d_out=320 padded only to the 128 lane.
    d_in2, d_out2 = 1280, 320
    x2 = jax.random.normal(k_x, (3, 5, d_in2), dtype=jnp.float32)
    w2 = init_linear_weight(k_w, d_in2, d_out2, dtype=jnp.float32)
    y2 = linear_pallas(x2, w2)
    jax.block_until_ready(y2)
    y2_ref = jnp.einsum("...i,oi->...o", x2, w2, precision=jax.lax.Precision.HIGHEST)
    assert y2.shape == (3, 5, d_out2)
    assert jnp.allclose(y2, y2_ref, atol=1e-3, rtol=1e-3)

    # 3) Optional bf16 compute path (f32 accumulation, f32 output dtype).
    y3 = linear_pallas(x2, w2, compute_dtype=jnp.bfloat16)
    jax.block_until_ready(y3)
    assert y3.dtype == y2_ref.dtype
    assert jnp.allclose(y3, y2_ref, atol=5e-2, rtol=5e-2)

    print("KERNEL_OK")
</pallas_src>

<mosaic_0001>
module attributes {stable_mosaic.version = 11 : i64} {
  func.func @_linear_kernel_single_k(%arg0: i32, %arg1: i32, %arg2: memref<16x128xf32, #tpu.memory_space<vmem>>, %arg3: memref<128x128xf32, #tpu.memory_space<vmem>>, %arg4: memref<16x128xf32, #tpu.memory_space<vmem>>) attributes {dimension_semantics = [#tpu.dimension_semantics<parallel>, #tpu.dimension_semantics<parallel>], iteration_bounds = array<i64: 1, 2>, scalar_prefetch = 0 : i64, scratch_operands = 0 : i64, tpu.core_type = #tpu.core_type<tc>, window_params = [{transform_indices = @transform_0, window_bounds = array<i64: 16, 128>}, {transform_indices = @transform_1, window_bounds = array<i64: 128, 128>}, {transform_indices = @transform_2, window_bounds = array<i64: 16, 128>}]} {
    %c0 = arith.constant 0 : index
    %c0_0 = arith.constant 0 : index
    %0 = vector.load %arg2[%c0, %c0_0] : memref<16x128xf32, #tpu.memory_space<vmem>>, vector<16x128xf32>
    %c0_1 = arith.constant 0 : index
    %c0_2 = arith.constant 0 : index
    %1 = vector.load %arg3[%c0_1, %c0_2] : memref<128x128xf32, #tpu.memory_space<vmem>>, vector<128x128xf32>
    %cst = arith.constant dense<0.000000e+00> : vector<16x128xf32>
    %2 = tpu.matmul %0, %1, %cst {dimension_numbers = #tpu.dot_dimension_numbers<[1], [1], [0], [0], [0, 0, 1, 0], [], []>} : vector<16x128xf32>, vector<128x128xf32>, vector<16x128xf32> -> vector<16x128xf32>
    %c0_3 = arith.constant 0 : index
    %c0_4 = arith.constant 0 : index
    %3 = vector.load %arg4[%c0_3, %c0_4] : memref<16x128xf32, #tpu.memory_space<vmem>>, vector<16x128xf32>
    tpu.vector_store %arg4[%c0_3, %c0_4], %2 {strides = array<i32>} : memref<16x128xf32, #tpu.memory_space<vmem>>, vector<16x128xf32>,
    return
  }
  func.func @transform_0(%arg0: i32, %arg1: i32) -> (i32, i32) {
    %c0_i32 = arith.constant 0 : i32
    %c0_i32_0 = arith.constant 0 : i32
    return %arg0, %c0_i32 : i32, i32
  }
  func.func @transform_1(%arg0: i32, %arg1: i32) -> (i32, i32) {
    %c0_i32 = arith.constant 0 : i32
    %c0_i32_0 = arith.constant 0 : i32
    return %arg1, %c0_i32 : i32, i32
  }
  func.func @transform_2(%arg0: i32, %arg1: i32) -> (i32, i32) {
    %c0_i32 = arith.constant 0 : i32
    return %arg0, %arg1 : i32, i32
  }
}

</mosaic_0001>

<bundles_post_ra>
// kernel: tpu_custom_call.1
= control target key start
LH: loop header
LB: loop body
LE: loop exit
PB: predicated region body
PF: predicated region fallthrough
CT: control target
= control target key end

     0   :  { %7 = vsyncpa [#allocation3], 0  ;;  %s927_s0 = inlined_call_operand.hbm [shape: f32[16,128], index: 0, kind: input, shape index: {}]   ;;  %s928_s1 = inlined_call_operand.hbm [shape: f32[256,128], index: 1, kind: input, shape index: {}]   ;;  %s929_s2 = inlined_call_operand.hbm [shape: f32[16,256], index: 2, kind: output, shape index: {}]  }
   0x1   :  { %8 = vsyncpa [#allocation6], 0 }
   0x2   :  { %10 = vsyncpa [#allocation6 + $0x1], 0 }
   0x3   :  { %11 = vsyncpa [#allocation4], 0 }
   0x4   :  { %13 = vsyncpa [#allocation4 + $0x1], 0  ;;  %s721_s9 = smov 0   ;;  %s723_s10 = smov 0  }
   0x5   :  { %s725_s11 = smov 0   ;;  %s727_s12 = smov 0  }
   0x6   :  { %s729_s13 = smov 0   ;;  %s731_s14 = smov 0  }
   0x7 LB: > { %s410_s15 = sadd.s32 4294967295, %s696_s14   ;;  %s411_s16 = sadd.s32 4294967294, %s696_s14   ;;  %s696_s14 = sphi %s731_s14, %s19_s14   ;;  %s692_s13 = sphi %s729_s13, %s949_s13   ;;  %s688_s12 = sphi %s727_s12, %s948_s12   ;;  %s684_s11 = sphi %s725_s11, %s947_s11   ;;  %s680_s10 = sphi %s723_s10, %s946_s10   ;;  %s676_s9 = sphi %s721_s9, %s945_s9  }
   0x8   : > { %p77_p0 = scmp.ne.s32.totalorder %s680_s10, %s676_s9  ;;  %p755_p1 = scmp.eq.s32.totalorder %s410_s15, 0 }
   0x9   : > { %p759_p2 = scmp.eq.s32.totalorder %s410_s15, 1  ;;  %p109_p3 = scmp.eq.s32.totalorder %s411_s16, 1 }
   0xa   : > { %p765_p4 = por %p755_p1, %p77_p0  ;;  %p412_p5 = scmp.ge.s32.totalorder %s696_s14, 1 }
   0xb   : > { %p770_p6 = por %p109_p3, %p77_p0  ;;  %p116_p7 = scmp.lt.s32.totalorder %s696_s14, 3 }
   0xc   : > { %s934_s19 = scalar_select %p765_p4, 1, 0 }
   0xd   : > { %s935_s20 = scalar_select %p770_p6, 1, 0 }
   0xe   : > { %p775_p8 = pnand %p412_p5, %p116_p7  ;;  %s698_s22 = smov [#allocation2]  }
   0xf   : > { %s131_s23 = sshll.u32 %s698_s22, 4  ;;  %s28_s25 = sadd.s32 1, %s692_s13  ;;  %s132_s23 = int_to_ptr.vmem [resolvable:$true] %s131_s23 }
  0x10   : > { %p488_p9 = pneg %p775_p8  ;;  %s569_s26 = scalar_lea.vmem %s132_s23, 256 }
  0x11   : > { %p570_p13 = scmp.ne.s32.totalorder %s132_s23, %s569_s26  ;;  %p577_p5 = scmp.lt.s32.totalorder %s132_s23, %s132_s23 }
  0x12   : > { %p784_p11 = pnand %p488_p9, %p755_p1  ;;  %p578_p7 = scmp.lt.s32.totalorder %s569_s26, %s569_s26 }
  0x14   : > { %p560_p12 = pneg %p784_p11  ;;  %p579_p6 = por %p578_p7, %p577_p5 }
  0x16   : > { %p572_p0 = pnand %p570_p13, %p560_p12 }
  0x18   : > { %p573_p3 = pneg %p572_p0 }
  0x1a   : > { %p580_p4 = pnand %p579_p6, %p573_p3 }
  0x1c   : > { %583 = shalt.err (!%p580_p4)
}
  0x1d   : > { %s931_s27 = smov 128   ;;  %s700_s28 = smov 8  }
  0x1e   : > { %491 = dma.hbm_to_vmem [thread:$0]  (!%p784_p11), %s927_s0, 256, %s132_s23, [#allocation3], %s931_s27, %s931_s27, %s700_s28  }
  0x1f   : > { %p29_p4 = scmp.ge.s32.totalorder %s28_s25, 2  ;;  %s64_s3 = sadd.s32 1, %s684_s11 }
  0x20   : > { %p71_p6 = scmp.ne.s32.totalorder %s684_s11, %s680_s10  ;;  %p72_p9 = scmp.eq.s32.totalorder %s696_s14, 0 }
  0x21   : > { %s951_s25 = smov (%p29_p4, %s28_s25), 0  ;;  %p501_p0 = scmp.lt.s32.totalorder %s696_s14, 2 }
  0x22   : > { %p805_p12 = por %p72_p9, %p71_p6  ;;  %p811_p13 = por %p759_p2, %p71_p6 }
  0x23   : > { %s61_s6 = ssub.s32 %s692_s13, %s951_s25  ;;  %s145_s7 = sand.u32 1, %s684_s11  }
  0x24   : > { %p62_p11 = scmp.eq.s32.totalorder %s61_s6, 0  ;;  %s415_s8 = sshll.u32 %s145_s7, 7 }
  0x25   : > { %s426_s16 = sshll.u32 %s692_s13, 11  ;;  %s149_s26 = scalar_lea.vmem [#allocation5], %s415_s8 }
  0x26   : > { %s820_s15 = scalar_select %p62_p11, %s684_s11, %s64_s3  }
  0x27   : > { %s155_s24 = scalar_lea.hbm %s928_s1, %s426_s16  ;;  %s156_s29 = sshll.u32 %s149_s26, 4  ;;  %s157_s29 = int_to_ptr.vmem [resolvable:$true] %s156_s29 }
  0x28   : > { %p828_p2 = pnand %p501_p0, %p805_p12  ;;  %s146_s30 = scalar_lea.sflag [#allocation6], %s145_s7 }
  0x29   : > { %s597_s6 = scalar_lea.vmem %s157_s29, 2048  ;;  %s701_s3 = smov [#allocation5]  }
  0x2a   : > { %p586_p3 = pneg %p828_p2  ;;  %p598_p5 = scmp.ne.s32.totalorder %s157_s29, %s597_s6 }
  0x2b   : > { %s602_s27 = sshll.u32 %s701_s3, 4  ;;  %s603_s27 = int_to_ptr.vmem [resolvable:$false] %s602_s27 }
  0x2c   : > { %p600_p7 = pnand %p598_p5, %p586_p3  ;;  %s604_s16 = scalar_lea.vmem %s603_s27, 4096 }
  0x2d   : > { %p605_p6 = scmp.lt.s32.totalorder %s157_s29, %s603_s27  ;;  %p606_p9 = scmp.lt.s32.totalorder %s604_s16, %s597_s6 }
  0x2e   : > { %p601_p4 = pneg %p600_p7 }
  0x2f   : > { %p607_p11 = por %p606_p9, %p605_p6 }
  0x31   : > { %p608_p10 = pnand %p607_p11, %p601_p4 }
  0x33   : > { %611 = shalt.err (!%p608_p10)
}
  0x34   : > { %s941_s4 = smov 128   ;;  %168 = sbr.rel (%p775_p8) target bundleno = 337 (0x151), region = 28 }
  0x35   : > { %495 = dma.hbm_to_vmem [thread:$0]  (!%p828_p2), %s155_s24, 2048, %s157_s29, %s146_s30, %s941_s4, %s941_s4, %s700_s28  }
  0x39   : > { %663 = dma.done.wait (%p755_p1), [#allocation3], 256  }
  0x3a   : > { %665 = vsyncadd (%p755_p1), [#allocation3], 4294967040  ;;  %s846_s27 = sand.u32 1, %s680_s10   ;;  %p942_p10 = scmp.ne.s32.totalorder %s934_s19, 0 }
  0x3b   : > { %s420_s7 = sshll.u32 %s846_s27, 7  ;;  %s175_s8 = scalar_lea.sflag [#allocation6], %s846_s27 }
  0x3c   : > { %s850_s22 = scalar_lea.vmem [#allocation5], %s420_s7 }
  0x3d   : > { %667 = dma.done.wait (%p942_p10), %s175_s8, 2048  }
  0x3e   : > { %669 = vsyncadd (%p942_p10), %s175_s8, 4294965248  ;;  %v219_v0 = vld [vmem:[%s850_s22 + $0x78] sm:$0xff]  ;;  %v218_v1 = vld [vmem:[%s850_s22 + $0x70] sm:$0xff]  ;;  %s421_s17 = sshll.u32 %s846_s27, 4  ;;  %s423_s28 = sshll.u32 %s688_s12, 7 }
  0x3f   : > { %445 = vmatprep.subr.mxu0 %v219_v0  ;;  %v217_v2 = vld [vmem:[%s850_s22 + $0x68] sm:$0xff]  ;;  %v202_v3 = vld [vmem:[#allocation2] sm:$0xff]  ;;  %v216_v4 = vld [vmem:[%s850_s22 + $0x60] sm:$0xff]  ;;  %s198_s19 = scalar_lea.vmem [#allocation7], %s421_s17  ;;  %s879_s26 = scalar_lea.hbm %s929_s2, %s423_s28 }
  0x40   : > { %446 = vmatpush3.xpose.msra.mxu0 %v219_v0  ;;  %477 = vmatprep.mubr.f32.mxu0 %v202_v3  ;;  %v215_v5 = vld [vmem:[%s850_s22 + $0x58] sm:$0xff]  ;;  %v214_v6 = vld [vmem:[%s850_s22 + $0x50] sm:$0xff]  ;;  %v213_v7 = vld [vmem:[%s850_s22 + $0x48] sm:$0xff]  ;;  %s313_s21 = sshll.u32 %s198_s19, 4  ;;  %s298_s29 = scalar_lea.sflag [#allocation4], %s846_s27  ;;  %s874_s21 = int_to_ptr.vmem [resolvable:$true] %s313_s21 }
  0x41   : > { %447 = vmatprep.subr.mxu0 %v218_v1  ;;  %v212_v8 = vld [vmem:[%s850_s22 + $0x40] sm:$0xff]  ;;  %v211_v9 = vld [vmem:[%s850_s22 + $0x38] sm:$0xff]  ;;  %v210_v10 = vld [vmem:[%s850_s22 + $0x30] sm:$0xff]  ;;  %s612_s18 = scalar_lea.vmem %s874_s21, 256  ;;  %s702_s12 = smov [#allocation7]  }
  0x42   : > { %v209_v11 = vld [vmem:[%s850_s22 + $0x28] sm:$0xff]  ;;  %v208_v12 = vld [vmem:[%s850_s22 + $0x20] sm:$0xff]  ;;  %v207_v13 = vld [vmem:[%s850_s22 + $0x18] sm:$0xff]  ;;  %p613_p1 = scmp.ne.s32.totalorder %s874_s21, %s612_s18  ;;  %s616_s30 = sshll.u32 %s702_s12, 4  ;;  %s617_s30 = int_to_ptr.vmem [resolvable:$false] %s616_s30 }
  0x43   : > { %v206_v14 = vld [vmem:[%s850_s22 + $0x10] sm:$0xff]  ;;  %v205_v15 = vld [vmem:[%s850_s22 + $0x8] sm:$0xff]  ;;  %v204_v16 = vld [vmem:[%s850_s22] sm:$0xff]  ;;  %s618_s6 = scalar_lea.vmem %s617_s30, 512  ;;  %p619_p0 = scmp.lt.s32.totalorder %s874_s21, %s617_s30 }
  0x44   : > { %448 = vmatpush3.xpose.msra.mxu0 %v218_v1  ;;  %v203_v17 = vld [vmem:[#allocation2 + $0x8] sm:$0xff]  ;;  %p614_p8 = pnand %p613_p1, %p811_p13  ;;  %p620_p2 = scmp.lt.s32.totalorder %s618_s6, %s612_s18 }
  0x45   : > { %449 = vmatprep.subr.mxu0 %v217_v2 }
  0x46   : > { %p615_p12 = pneg %p614_p8  ;;  %p621_p3 = por %p620_p2, %p619_p0 }
  0x48   : > { %450 = vmatpush3.xpose.msra.mxu0 %v217_v2  ;;  %p622_p5 = pnand %p621_p3, %p615_p12 }
  0x49   : > { %451 = vmatprep.subr.mxu0 %v216_v4 }
  0x4c   : > { %452 = vmatpush3.xpose.msra.mxu0 %v216_v4 }
  0x4d   : > { %453 = vmatprep.subr.mxu0 %v215_v5 }
  0x50   : > { %454 = vmatpush3.xpose.msra.mxu0 %v215_v5 }
  0x51   : > { %455 = vmatprep.subr.mxu0 %v214_v6 }
  0x54   : > { %456 = vmatpush3.xpose.msra.mxu0 %v214_v6 }
  0x55   : > { %457 = vmatprep.subr.mxu0 %v213_v7 }
  0x58   : > { %458 = vmatpush3.xpose.msra.mxu0 %v213_v7 }
  0x59   : > { %459 = vmatprep.subr.mxu0 %v212_v8 }
  0x5c   : > { %460 = vmatpush3.xpose.msra.mxu0 %v212_v8 }
  0x5d   : > { %461 = vmatprep.subr.mxu0 %v211_v9 }
  0x60   : > { %462 = vmatpush3.xpose.msra.mxu0 %v211_v9 }
  0x61   : > { %463 = vmatprep.subr.mxu0 %v210_v10 }
  0x64   : > { %464 = vmatpush3.xpose.msra.mxu0 %v210_v10 }
  0x65   : > { %465 = vmatprep.subr.mxu0 %v209_v11 }
  0x68   : > { %466 = vmatpush3.xpose.msra.mxu0 %v209_v11 }
  0x69   : > { %467 = vmatprep.subr.mxu0 %v208_v12 }
  0x6c   : > { %468 = vmatpush3.xpose.msra.mxu0 %v208_v12 }
  0x6d   : > { %469 = vmatprep.subr.mxu0 %v207_v13 }
  0x70   : > { %470 = vmatpush3.xpose.msra.mxu0 %v207_v13 }
  0x71   : > { %471 = vmatprep.subr.mxu0 %v206_v14 }
  0x74   : > { %472 = vmatpush3.xpose.msra.mxu0 %v206_v14 }
  0x75   : > { %473 = vmatprep.subr.mxu0 %v205_v15 }
  0x78   : > { %474 = vmatpush3.xpose.msra.mxu0 %v205_v15 }
  0x79   : > { %475 = vmatprep.subr.mxu0 %v204_v16 }
  0x7c   : > { %476 = vmatpush3.xpose.msra.mxu0 %v204_v16 }
  0x7f   : > { %478 = vmatmul.mubr.f32.vlgmr.msra.gmra.mxu0 %v203_v17 }
 0x13f   : > { %v479_v18 = vpop.f32.mrf.mxu0 }
 0x140   : > { %296 = vst [vmem:[%s198_s19 + $0x8] sm:$0xff] %v479_v18 }
 0x141   : > { %v286_v19 = vpop.f32.mrf.mxu0 }
 0x142   : > { %295 = vst [vmem:[%s198_s19] sm:$0xff] %v286_v19 }
 0x143   : > { %625 = shalt.err (!%p622_p5)
}
 0x144   : > { %s626_s3 = scalar_lea.hbm %s879_s26, 256  ;;  %s630_s7 = scalar_lea.hbm %s929_s2, 512 }
 0x145   : > { %p627_p7 = scmp.ne.s32.totalorder %s879_s26, %s626_s3  ;;  %p631_p9 = scmp.lt.s32.totalorder %s879_s26, %s929_s2 }
 0x146   : > { %p632_p11 = scmp.lt.s32.totalorder %s630_s7, %s626_s3 }
 0x147   : > { %p628_p4 = pnand %p627_p7, %p811_p13 }
 0x148   : > { %p633_p10 = por %p632_p11, %p631_p9 }
 0x149   : > { %p629_p6 = pneg %p628_p4 }
 0x14b   : > { %p634_p1 = pnand %p633_p10, %p629_p6 }
 0x14d   : > { %637 = shalt.err (!%p634_p1)
}
 0x14e   : > { %s703_s17 = smov 128   ;;  %s704_s19 = smov 256  }
 0x14f   : > { %s705_s28 = smov 8  }
 0x150   : > { %486 = dma.vmem_to_hbm [thread:$0]  (%p811_p13), %s874_s21, 256, %s879_s26, %s298_s29, %s703_s17, %s704_s19, %s705_s28  }
 0x151 PF: > { %s328_s23 = sand.u32 1, %s676_s9   ;;  %p943_p8 = scmp.ne.s32.totalorder %s935_s20, 0 }
 0x152   : > { %p944_p12 = scmp.ge.s32.totalorder %s696_s14, 2  ;;  %s329_s24 = scalar_lea.sflag [#allocation4], %s328_s23 }
 0x154   : > { %p497_p0 = pnand %p944_p12, %p943_p8 }
 0x156   : > { %p498_p2 = pneg %p497_p0 }
 0x158   : > { %671 = dma.done.wait (%p498_p2), %s329_s24, 256  }
 0x159   : > { %673 = vsyncadd (%p498_p2), %s329_s24, 4294967040  ;;  %s19_s14 = sadd.s32 1, %s696_s14   ;;  %s945_s9 = smov %s680_s10 }
 0x15a   : > { %p16_p3 = scmp.ge.s32.totalorder %s19_s14, 4   ;;  %s946_s10 = smov %s684_s11 }
 0x15b   : > { %s947_s11 = smov %s820_s15  ;;  %s948_s12 = smov %s692_s13 }
 0x15c   : > { %s949_s13 = smov %s951_s25  ;;  %18 = sbr.rel (!%p16_p3) target bundleno = 7 (0x7), region = 79 }
 0x161   :  { %334 = vsyncpa [#allocation3], 1 }
 0x162   :  { %336 = vsyncpa [#allocation3 + $0x1], 1 }
 0x163   :  { %337 = vsyncpa [#allocation6], 1 }
 0x164   :  { %339 = vsyncpa [#allocation6 + $0x1], 1 }
 0x165   :  { %340 = vsyncpa [#allocation4], 1 }
 0x166   :  { %342 = vsyncpa [#allocation4 + $0x1], 1 }

</bundles_post_ra>
